<compile_context>
chip_gen: v7x
topology: tpu7x:2x2x1
jax: 0.10.0
libtpu: 0.0.40
codegen_flags: <defaults>
</compile_context>

<pallas_src>
import math
import functools

import jax
import jax.numpy as jnp
from jax.experimental import pallas as pl
from jax.experimental.pallas import tpu as pltpu


def _round_up(n, m):
    return ((n + m - 1) // m) * m


# --------------------------------------------------------------------------
# Pass 1: squeeze (mean/max over T) + excite (fc1 -> relu -> fc2 -> sigmoid)
# --------------------------------------------------------------------------
def _squeeze_excite_kernel(x_ref, w1_ref, b1_ref, w2_ref, b2_ref, gate_ref,
                           sum_acc, max_acc, *, t_true, t_block, needs_mask):
    t_idx = pl.program_id(1)
    n_t = pl.num_programs(1)

    @pl.when(t_idx == 0)
    def _():
        sum_acc[...] = jnp.zeros_like(sum_acc)
        max_acc[...] = jnp.full_like(max_acc, -jnp.inf)

    xf = x_ref[...].astype(jnp.float32)                  # (Bb, C, Tt)

    if needs_mask:
        # Ragged T: padded lanes must not bias the mean or win the max.
        start = t_idx * t_block
        lane = jax.lax.broadcasted_iota(jnp.int32, xf.shape, 2)
        valid = (lane + start) < t_true
        x_for_sum = jnp.where(valid, xf, 0.0)
        x_for_max = jnp.where(valid, xf, -jnp.inf)
    else:
        x_for_sum = xf
        x_for_max = xf

    sum_acc[...] = sum_acc[...] + jnp.sum(x_for_sum, axis=2)          # (Bb, C)
    max_acc[...] = jnp.maximum(max_acc[...], jnp.max(x_for_max, axis=2))

    @pl.when(t_idx == n_t - 1)
    def _():
        mean_sq = sum_acc[...] * (1.0 / float(t_true))   # divide by TRUE T
        max_sq = max_acc[...]

        w1 = w1_ref[...]
        b1 = b1_ref[...]
        # Two small 8-padded matmuls (no sublane-misaligned concat/split).
        h = (jnp.maximum(jnp.dot(mean_sq, w1, preferred_element_type=jnp.float32) + b1, 0.0)
             + jnp.maximum(jnp.dot(max_sq, w1, preferred_element_type=jnp.float32) + b1, 0.0))

        gate = jnp.dot(h, w2_ref[...], preferred_element_type=jnp.float32) + b2_ref[...]
        gate_ref[...] = jax.nn.sigmoid(gate).astype(gate_ref.dtype)


# --------------------------------------------------------------------------
# Pass 2: lane-dense elementwise scale   out = x * gate[:, :, None]
# --------------------------------------------------------------------------
def _scale_kernel(x_ref, gate_ref, o_ref):
    gate = gate_ref[...].astype(jnp.float32)             # (Bb, C)
    # Per-tile upcast (v5e has no bf16 VPU math); store back at x's dtype.
    o_ref[...] = (x_ref[...].astype(jnp.float32) * gate[:, :, None]).astype(o_ref.dtype)


# --------------------------------------------------------------------------
# Wrapper
# --------------------------------------------------------------------------
def channel_cbam_layer(x, params, *, t_block=None, b_block=None):
    """x: (B, C, T); params hold PyTorch-shaped fc weights (out, in) / biases (out,)."""
    B, C, T = x.shape
    C_red = params["w1"].shape[0]
    dtype = x.dtype
    itemsize = jnp.dtype(dtype).itemsize

    # Glue: transpose weights once so the kernel does x @ W; keep biases 2-D.
    w1_t = params["w1"].T.astype(jnp.float32)            # (C, C_red)
    w2_t = params["w2"].T.astype(jnp.float32)            # (C_red, C)
    b1 = params["b1"].reshape(1, C_red).astype(jnp.float32)
    b2 = params["b2"].reshape(1, C).astype(jnp.float32)

    # ---- tile selection (generation-aware VMEM budget) -------------------
    if b_block is None:
        if B <= 8:
            b_block = B
        elif B % 8 == 0:
            b_block = 8
        else:
            b_block = B  # TODO(synk): pad batch to a multiple of 8 for very large ragged B
    if t_block is None:
        t_block = min(_round_up(T, 128), 512)
    t_block = max(128, _round_up(t_block, 128))
    t_block = min(t_block, _round_up(T, 128))

    # Cap double-buffered x(in)+out block bytes at ~24 MiB (safe under v7x's
    # 32 MiB default scoped VMEM / 64 MiB physical; trivially fits v5e/v6e).
    budget = 24 * 1024 * 1024
    while 4 * b_block * C * t_block * itemsize > budget and t_block > 128:
        t_block = max(128, (t_block // 2 // 128) * 128)
    while 4 * b_block * C * t_block * itemsize > budget and b_block > 1:
        b_block = max(1, b_block // 2)

    T_pad = _round_up(T, t_block)
    needs_mask = (T_pad != T)
    x_p = jnp.pad(x, ((0, 0), (0, 0), (0, T_pad - T))) if needs_mask else x

    n_b = pl.cdiv(B, b_block)
    n_t = T_pad // t_block

    # ---- pass 1: gate = sigmoid(fc2(relu(fc1(mean)) + relu(fc1(max)))) ----
    kernel1 = functools.partial(_squeeze_excite_kernel,
                                t_true=T, t_block=t_block, needs_mask=needs_mask)
    gate = pl.pallas_call(
        kernel1,
        out_shape=jax.ShapeDtypeStruct((B, C), jnp.float32),
        grid=(n_b, n_t),
        in_specs=[
            pl.BlockSpec((b_block, C, t_block), lambda i, t: (i, 0, t)),  # x
            pl.BlockSpec((C, C_red), lambda i, t: (0, 0)),                # fc1 W (in,out)
            pl.BlockSpec((1, C_red), lambda i, t: (0, 0)),                # fc1 b
            pl.BlockSpec((C_red, C), lambda i, t: (0, 0)),                # fc2 W (in,out)
            pl.BlockSpec((1, C), lambda i, t: (0, 0)),                    # fc2 b
        ],
        out_specs=pl.BlockSpec((b_block, C), lambda i, t: (i, 0)),
        scratch_shapes=[pltpu.VMEM((b_block, C), jnp.float32),   # running sum
                        pltpu.VMEM((b_block, C), jnp.float32)],  # running max
        compiler_params=pltpu.CompilerParams(
            dimension_semantics=("parallel", "arbitrary")),
    )(x_p, w1_t, b1, w2_t, b2)

    # ---- pass 2: out = x * gate[:, :, None] (lane-dense tiles) ------------
    out = pl.pallas_call(
        _scale_kernel,
        out_shape=jax.ShapeDtypeStruct((B, C, T_pad), dtype),
        grid=(n_b, n_t),
        in_specs=[
            pl.BlockSpec((b_block, C, t_block), lambda i, t: (i, 0, t)),  # x
            pl.BlockSpec((b_block, C), lambda i, t: (i, 0)),              # gate
        ],
        out_specs=pl.BlockSpec((b_block, C, t_block), lambda i, t: (i, 0, t)),
        compiler_params=pltpu.CompilerParams(
            dimension_semantics=("parallel", "parallel")),
    )(x_p, gate)

    if needs_mask:
        out = out[:, :, :T]
    return out


# --------------------------------------------------------------------------
# Synthetic init + pure-JAX reference
# --------------------------------------------------------------------------
def init_params(key, num_channels, reduction_ratio=2, dtype=jnp.float32):
    """Deterministic synthetic init (PyTorch-like uniform fan-in bounds)."""
    C_red = num_channels // reduction_ratio
    ks = jax.random.split(key, 4)

    def lin(kw, kb, out_f, in_f):
        bound = 1.0 / math.sqrt(in_f)
        w = jax.random.uniform(kw, (out_f, in_f), dtype, -bound, bound)
        b = jax.random.uniform(kb, (out_f,), dtype, -bound, bound)
        return w, b

    w1, b1 = lin(ks[0], ks[1], C_red, num_channels)
    w2, b2 = lin(ks[2], ks[3], num_channels, C_red)
    return dict(w1=w1, b1=b1, w2=w2, b2=b2)


def reference(x, params):
    """Pure-JAX reference mirroring the PyTorch forward."""
    mean_sq = x.mean(axis=2)
    max_sq = x.max(axis=2)
    h = (jax.nn.relu(mean_sq @ params["w1"].T + params["b1"])
         + jax.nn.relu(max_sq @ params["w1"].T + params["b1"]))
    gate = jax.nn.sigmoid(h @ params["w2"].T + params["b2"])
    return x * gate[:, :, None]


if __name__ == "__main__":
    B, C, T = 2, 32, 128          # batch, num_channels, temporal length
    reduction_ratio = 2

    key = jax.random.PRNGKey(0)
    kx, kp = jax.random.split(key)
    x = jax.random.normal(kx, (B, C, T), jnp.float32)
    params = init_params(kp, C, reduction_ratio)

    out = channel_cbam_layer(x, params)
    out = jax.block_until_ready(out)

    ref = reference(x, params)
    assert out.shape == (B, C, T)
    assert jnp.allclose(out, ref, atol=1e-4, rtol=1e-4), "mismatch vs reference"

    # Second check: ragged T exercises the padded/masked reduction path.
    T2 = 200
    x2 = jax.random.normal(jax.random.PRNGKey(1), (B, C, T2), jnp.float32)
    out2 = jax.block_until_ready(channel_cbam_layer(x2, params))
    assert out2.shape == (B, C, T2)
    assert jnp.allclose(out2, reference(x2, params), atol=1e-4, rtol=1e-4), \
        "mismatch vs reference (ragged T)"

    print("KERNEL_OK")
</pallas_src>

<mosaic_0001>
module attributes {stable_mosaic.version = 11 : i64} {
  func.func @_squeeze_excite_kernel(%arg0: i32, %arg1: i32, %arg2: memref<2x32x128xf32, #tpu.memory_space<vmem>>, %arg3: memref<32x16xf32, #tpu.memory_space<vmem>>, %arg4: memref<1x16xf32, #tpu.memory_space<vmem>>, %arg5: memref<16x32xf32, #tpu.memory_space<vmem>>, %arg6: memref<1x32xf32, #tpu.memory_space<vmem>>, %arg7: memref<2x32xf32, #tpu.memory_space<vmem>>, %arg8: memref<2x32xf32, #tpu.memory_space<vmem>>, %arg9: memref<2x32xf32, #tpu.memory_space<vmem>>) attributes {dimension_semantics = [#tpu.dimension_semantics<parallel>, #tpu.dimension_semantics<arbitrary>], iteration_bounds = array<i64: 1, 1>, scalar_prefetch = 0 : i64, scratch_operands = 2 : i64, tpu.core_type = #tpu.core_type<tc>, window_params = [{transform_indices = @transform_0, window_bounds = array<i64: 2, 32, 128>}, {pipeline_mode = #tpu.pipeline_mode<synchronous>, transform_indices = @transform_1, window_bounds = array<i64: 32, 16>}, {pipeline_mode = #tpu.pipeline_mode<synchronous>, transform_indices = @transform_2, window_bounds = array<i64: 1, 16>}, {pipeline_mode = #tpu.pipeline_mode<synchronous>, transform_indices = @transform_3, window_bounds = array<i64: 16, 32>}, {pipeline_mode = #tpu.pipeline_mode<synchronous>, transform_indices = @transform_4, window_bounds = array<i64: 1, 32>}, {transform_indices = @transform_5, window_bounds = array<i64: 2, 32>}]} {
    %c0_i32 = arith.constant 0 : i32
    %0 = arith.cmpi eq, %arg1, %c0_i32 : i32
    %1 = arith.extui %0 : i1 to i32
    %c0_i32_0 = arith.constant 0 : i32
    %2 = arith.cmpi ne, %1, %c0_i32_0 : i32
    scf.if %2 {
      %cst_14 = arith.constant 0.000000e+00 : f32
      %15 = vector.broadcast %cst_14 : f32 to vector<2x32xf32>
      %c0_15 = arith.constant 0 : index
      %c0_16 = arith.constant 0 : index
      %16 = vector.load %arg8[%c0_15, %c0_16] : memref<2x32xf32, #tpu.memory_space<vmem>>, vector<2x32xf32>
      tpu.vector_store %arg8[%c0_15, %c0_16], %15 {strides = array<i32>} : memref<2x32xf32, #tpu.memory_space<vmem>>, vector<2x32xf32>,
      %cst_17 = arith.constant 0xFF800000 : f32
      %17 = vector.broadcast %cst_17 : f32 to vector<2x32xf32>
      %c0_18 = arith.constant 0 : index
      %c0_19 = arith.constant 0 : index
      %18 = vector.load %arg9[%c0_18, %c0_19] : memref<2x32xf32, #tpu.memory_space<vmem>>, vector<2x32xf32>
      tpu.vector_store %arg9[%c0_18, %c0_19], %17 {strides = array<i32>} : memref<2x32xf32, #tpu.memory_space<vmem>>, vector<2x32xf32>,
    } else {
    }
    %c0 = arith.constant 0 : index
    %c0_1 = arith.constant 0 : index
    %c0_2 = arith.constant 0 : index
    %3 = vector.load %arg2[%c0, %c0_1, %c0_2] : memref<2x32x128xf32, #tpu.memory_space<vmem>>, vector<2x32x128xf32>
    %c0_3 = arith.constant 0 : index
    %c0_4 = arith.constant 0 : index
    %4 = vector.load %arg8[%c0_3, %c0_4] : memref<2x32xf32, #tpu.memory_space<vmem>>, vector<2x32xf32>
    %cst = arith.constant dense<0.000000e+00> : vector<2x32xf32>
    %5 = vector.multi_reduction <add>, %3, %cst [2] : vector<2x32x128xf32> to vector<2x32xf32>
    %6 = arith.addf %4, %5 : vector<2x32xf32>
    %c0_5 = arith.constant 0 : index
    %c0_6 = arith.constant 0 : index
    %7 = vector.load %arg8[%c0_5, %c0_6] : memref<2x32xf32, #tpu.memory_space<vmem>>, vector<2x32xf32>
    tpu.vector_store %arg8[%c0_5, %c0_6], %6 {strides = array<i32>} : memref<2x32xf32, #tpu.memory_space<vmem>>, vector<2x32xf32>,
    %c0_7 = arith.constant 0 : index
    %c0_8 = arith.constant 0 : index
    %8 = vector.load %arg9[%c0_7, %c0_8] : memref<2x32xf32, #tpu.memory_space<vmem>>, vector<2x32xf32>
    %cst_9 = arith.constant dense<0xFF800000> : vector<2x32xf32>
    %9 = vector.multi_reduction <maximumf>, %3, %cst_9 [2] : vector<2x32x128xf32> to vector<2x32xf32>
    %10 = arith.maximumf %8, %9 : vector<2x32xf32>
    %c0_10 = arith.constant 0 : index
    %c0_11 = arith.constant 0 : index
    %11 = vector.load %arg9[%c0_10, %c0_11] : memref<2x32xf32, #tpu.memory_space<vmem>>, vector<2x32xf32>
    tpu.vector_store %arg9[%c0_10, %c0_11], %10 {strides = array<i32>} : memref<2x32xf32, #tpu.memory_space<vmem>>, vector<2x32xf32>,
    %c0_i32_12 = arith.constant 0 : i32
    %12 = arith.cmpi eq, %arg1, %c0_i32_12 : i32
    %13 = arith.extui %12 : i1 to i32
    %c0_i32_13 = arith.constant 0 : i32
    %14 = arith.cmpi ne, %13, %c0_i32_13 : i32
    scf.if %14 {
      %c0_14 = arith.constant 0 : index
      %c0_15 = arith.constant 0 : index
      %15 = vector.load %arg8[%c0_14, %c0_15] : memref<2x32xf32, #tpu.memory_space<vmem>>, vector<2x32xf32>
      %cst_16 = arith.constant 7.812500e-03 : f32
      %16 = vector.broadcast %cst_16 : f32 to vector<2x32xf32>
      %17 = arith.mulf %15, %16 : vector<2x32xf32>
      %c0_17 = arith.constant 0 : index
      %c0_18 = arith.constant 0 : index
      %18 = vector.load %arg9[%c0_17, %c0_18] : memref<2x32xf32, #tpu.memory_space<vmem>>, vector<2x32xf32>
      %c0_19 = arith.constant 0 : index
      %c0_20 = arith.constant 0 : index
      %19 = vector.load %arg3[%c0_19, %c0_20] : memref<32x16xf32, #tpu.memory_space<vmem>>, vector<32x16xf32>
      %c0_21 = arith.constant 0 : index
      %c0_22 = arith.constant 0 : index
      %20 = vector.load %arg4[%c0_21, %c0_22] : memref<1x16xf32, #tpu.memory_space<vmem>>, vector<1x16xf32>
      %cst_23 = arith.constant dense<0.000000e+00> : vector<2x16xf32>
      %21 = tpu.matmul %17, %19, %cst_23 {dimension_numbers = #tpu.dot_dimension_numbers<[1], [0], [0], [1], [0, 0, 1, 1], [], []>} : vector<2x32xf32>, vector<32x16xf32>, vector<2x16xf32> -> vector<2x16xf32>
      %22 = vector.broadcast %20 : vector<1x16xf32> to vector<2x16xf32>
      %23 = arith.addf %21, %22 : vector<2x16xf32>
      %cst_24 = arith.constant 0.000000e+00 : f32
      %24 = vector.broadcast %cst_24 : f32 to vector<2x16xf32>
      %25 = arith.maximumf %23, %24 : vector<2x16xf32>
      %cst_25 = arith.constant dense<0.000000e+00> : vector<2x16xf32>
      %26 = tpu.matmul %18, %19, %cst_25 {dimension_numbers = #tpu.dot_dimension_numbers<[1], [0], [0], [1], [0, 0, 1, 1], [], []>} : vector<2x32xf32>, vector<32x16xf32>, vector<2x16xf32> -> vector<2x16xf32>
      %27 = vector.broadcast %20 : vector<1x16xf32> to vector<2x16xf32>
      %28 = arith.addf %26, %27 : vector<2x16xf32>
      %cst_26 = arith.constant 0.000000e+00 : f32
      %29 = vector.broadcast %cst_26 : f32 to vector<2x16xf32>
      %30 = arith.maximumf %28, %29 : vector<2x16xf32>
      %31 = arith.addf %25, %30 : vector<2x16xf32>
      %c0_27 = arith.constant 0 : index
      %c0_28 = arith.constant 0 : index
      %32 = vector.load %arg5[%c0_27, %c0_28] : memref<16x32xf32, #tpu.memory_space<vmem>>, vector<16x32xf32>
      %cst_29 = arith.constant dense<0.000000e+00> : vector<2x32xf32>
      %33 = tpu.matmul %31, %32, %cst_29 {dimension_numbers = #tpu.dot_dimension_numbers<[1], [0], [0], [1], [0, 0, 1, 1], [], []>} : vector<2x16xf32>, vector<16x32xf32>, vector<2x32xf32> -> vector<2x32xf32>
      %c0_30 = arith.constant 0 : index
      %c0_31 = arith.constant 0 : index
      %34 = vector.load %arg6[%c0_30, %c0_31] : memref<1x32xf32, #tpu.memory_space<vmem>>, vector<1x32xf32>
      %35 = vector.broadcast %34 : vector<1x32xf32> to vector<2x32xf32>
      %36 = arith.addf %33, %35 : vector<2x32xf32>
      %37 = arith.negf %36 : vector<2x32xf32>
      %38 = math.exp %37 : vector<2x32xf32>
      %cst_32 = arith.constant 1.000000e+00 : f32
      %39 = vector.broadcast %cst_32 : f32 to vector<2x32xf32>
      %40 = arith.addf %39, %38 : vector<2x32xf32>
      %41 = arith.divf %39, %40 : vector<2x32xf32>
      %c0_33 = arith.constant 0 : index
      %c0_34 = arith.constant 0 : index
      %42 = vector.load %arg7[%c0_33, %c0_34] : memref<2x32xf32, #tpu.memory_space<vmem>>, vector<2x32xf32>
      tpu.vector_store %arg7[%c0_33, %c0_34], %41 {strides = array<i32>} : memref<2x32xf32, #tpu.memory_space<vmem>>, vector<2x32xf32>,
    } else {
    }
    return
  }
  func.func @transform_0(%arg0: i32, %arg1: i32) -> (i32, i32, i32) {
    %c0_i32 = arith.constant 0 : i32
    %c0_i32_0 = arith.constant 0 : i32
    return %arg0, %c0_i32, %arg1 : i32, i32, i32
  }
  func.func @transform_1(%arg0: i32, %arg1: i32) -> (i32, i32) {
    %c0_i32 = arith.constant 0 : i32
    %c0_i32_0 = arith.constant 0 : i32
    %c0_i32_1 = arith.constant 0 : i32
    return %c0_i32, %c0_i32_0 : i32, i32
  }
  func.func @transform_2(%arg0: i32, %arg1: i32) -> (i32, i32) {
    %c0_i32 = arith.constant 0 : i32
    %c0_i32_0 = arith.constant 0 : i32
    %c0_i32_1 = arith.constant 0 : i32
    return %c0_i32, %c0_i32_0 : i32, i32
  }
  func.func @transform_3(%arg0: i32, %arg1: i32) -> (i32, i32) {
    %c0_i32 = arith.constant 0 : i32
    %c0_i32_0 = arith.constant 0 : i32
    %c0_i32_1 = arith.constant 0 : i32
    return %c0_i32, %c0_i32_0 : i32, i32
  }
  func.func @transform_4(%arg0: i32, %arg1: i32) -> (i32, i32) {
    %c0_i32 = arith.constant 0 : i32
    %c0_i32_0 = arith.constant 0 : i32
    %c0_i32_1 = arith.constant 0 : i32
    return %c0_i32, %c0_i32_0 : i32, i32
  }
  func.func @transform_5(%arg0: i32, %arg1: i32) -> (i32, i32) {
    %c0_i32 = arith.constant 0 : i32
    %c0_i32_0 = arith.constant 0 : i32
    return %arg0, %c0_i32 : i32, i32
  }
}

</mosaic_0001>

<bundles_post_ra>
// kernel: tpu_custom_call.1
= control target key start
LH: loop header
LB: loop body
LE: loop exit
PB: predicated region body
PF: predicated region fallthrough
CT: control target
= control target key end

     0   :  { %10 = vsyncpa [#allocation5], 0  ;;  %s703_s0 = inlined_call_operand.hbm [shape: f32[2,32,128], index: 0, kind: input, shape index: {}]   ;;  %s704_s1 = inlined_call_operand.vmem [shape: f32[32,16], index: 1, kind: input, shape index: {}]   ;;  %s705_s2 = inlined_call_operand.vmem [shape: f32[1,16], index: 2, kind: input, shape index: {}]   ;;  %s706_s3 = inlined_call_operand.vmem [shape: f32[16,32], index: 3, kind: input, shape index: {}]   ;;  %s707_s4 = inlined_call_operand.vmem [shape: f32[1,32], index: 4, kind: input, shape index: {}]   ;;  %s708_s5 = inlined_call_operand.hbm [shape: f32[2,32], index: 5, kind: output, shape index: {}]  }
   0x1   :  { %11 = vsyncpa [#allocation6], 0  ;;  %s589_s18 = smov [#allocation4]   ;;  %s541_s22 = scalar_lea.hbm %s703_s0, 1024 }
   0x2   :  { %s17_s19 = sshll.u32 %s589_s18, 4  ;;  %p542_p0 = scmp.ne.s32.totalorder %s703_s0, %s541_s22  ;;  %s18_s19 = int_to_ptr.vmem [resolvable:$true] %s17_s19 }
   0x3   :  { %p545_p1 = scmp.lt.u32.totalorder %s541_s22, %s703_s0 }
   0x5   :  { %p547_p2 = pnand %p545_p1, %p542_p0 }
   0x7   :  { %550 = shalt.err (!%p547_p2)
}
   0x8   :  { %s551_s27 = scalar_lea.vmem %s18_s19, 1024  ;;  %p556_p4 = scmp.lt.s32.totalorder %s18_s19, %s18_s19 }
   0x9   :  { %p552_p3 = scmp.ne.s32.totalorder %s18_s19, %s551_s27  ;;  %p557_p5 = scmp.lt.s32.totalorder %s551_s27, %s551_s27 }
   0xb   :  { %p558_p6 = por %p557_p5, %p556_p4 }
   0xd   :  { %p559_p7 = pnand %p558_p6, %p552_p3 }
   0xf   :  { %562 = shalt.err (!%p559_p7)
}
  0x10   :  { %s590_s28 = smov 128   ;;  %s591_s29 = smov 8  }
  0x11   :  { %23 = dma.hbm_to_vmem [thread:$0]  %s703_s0, 1024, %s18_s19, [#allocation5], %s590_s28, %s590_s28, %s591_s29  }
  0x12   :  { %585 = dma.done.wait [#allocation5], 1024  }
  0x13   :  { %586 = vsyncadd [#allocation5], 4294966272  ;;  %v46_v0 = vld [vmem:[#allocation4 + $0x20] sm:$0xff]  ;;  %v47_v2 = vld [vmem:[#allocation4 + $0x28] sm:$0xff]  ;;  %vm39_vm0 = vcmask 254976   ;;  %v592_v8 = vmov 0.0   ;;  %v75_v17 = vlaneseq }
  0x14   :  { %v42_v1 = vld [vmem:[#allocation4] sm:$0xff]  ;;  %59 = vadd.xlane.f32.xlu1 %v46_v0  ;;  %v43_v3 = vld [vmem:[#allocation4 + $0x8] sm:$0xff]  ;;  %v48_v4 = vld [vmem:[#allocation4 + $0x30] sm:$0xff]  ;;  %40 = vst.msk [vmem:[#allocation2] sm:$0x3] %vm39_vm0, %v592_v8  ;;  %v593_v12 = vmov 0.0|0.0  }
  0x15   :  { %51 = vadd.xlane.f32.xlu0 %v42_v1  ;;  %v44_v5 = vld [vmem:[#allocation4 + $0x10] sm:$0xff]  ;;  %v49_v6 = vld [vmem:[#allocation4 + $0x38] sm:$0xff]  ;;  %v201_v10 = vld [vmem:[%s704_s1 + $0x8] sm:$0xff]  ;;  %514 = vmatprep.subr.bf16.mxu0 %v593_v12  ;;  %v594_v16 = vmov -inf   ;;  %vm595_vm1 = vmmov 0   ;;  %v76_v18 = vand.u32 127, %v75_v17 }
  0x16   :  { %v45_v7 = vld [vmem:[#allocation4 + $0x18] sm:$0xff]  ;;  %520 = vmatprep.subr.bf16.mxu1 %v593_v12  ;;  %v202_v13 = vld [vmem:[%s704_s1 + $0x10] sm:$0xff]  ;;  %41 = vst.msk [vmem:[#allocation3] sm:$0x3] %vm39_vm0, %v594_v16  ;;  %493 = vmatprep.mubr.msk.f32.mxu0 %vm595_vm1, %v592_v8  ;;  %v78_v23 = vshrl.u32 %v75_v17, 7  ;;  %vm86_vm2 = vcmask 130112  }
  0x17   :  { %v200_v9 = vld [vmem:[%s704_s1] sm:$0xff]  ;;  %v203_v14 = vld [vmem:[%s704_s1 + $0x18] sm:$0xff]  ;;  %504 = vmatprep.mubr.msk.f32.mxu1 %vm595_vm1, %v592_v8  ;;  %v81_v21 = vadd.s32 4294967288, %v76_v18  ;;  %v88_v22 = vadd.s32 4294967280, %v76_v18  ;;  %v95_v27 = vadd.s32 4294967272, %v76_v18  ;;  %vm93_vm3 = vcmask 195712  }
  0x18   :  { %61 = vadd.xlane.f32.xlu1 %v47_v2  ;;  %v515_v11 = vpack.c.bf16 %v201_v10, %v200_v9  ;;  %v518_v15 = vpack.c.bf16 %v203_v14, %v202_v13  ;;  %v79_v29 = vsub.s32 %v76_v18, %v78_v23  ;;  %vm100_vm4 = vcmask 261312   ;;  %v361_v17 = vld [vmem:[%s706_s3] sm:$0xff] }
  0x19   :  { %53 = vadd.xlane.f32.xlu0 %v43_v3  ;;  %v84_v26 = vsub.s32 %v81_v21, %v78_v23  ;;  %v91_v28 = vsub.s32 %v88_v22, %v78_v23  ;;  %v98_v34 = vsub.s32 %v95_v27, %v78_v23  ;;  %vm121_vm5 = vcmask 1041409   ;;  %v466_v21 = vld [vmem:[%s705_s2] ss:$0 sm:$0xff]  ;;  %s596_s2 = smov [#allocation7]  }
  0x1a   :  { %516 = vmatpush3.bf16.msra.mxu0 %v515_v11  ;;  %522 = vmatpush3.bf16.msra.mxu1 %v515_v11  ;;  %vm211_vm6 = vcmask 261120   ;;  %vm370_vm7 = vcmask 130048  }
  0x1b   :  { %517 = vmatprep.subr.bf16.mxu0 %v593_v12  ;;  %523 = vmatprep.subr.bf16.mxu1 %v593_v12  ;;  %v50_v47 = vld [vmem:[#allocation2] sm:$0x3] }
  0x1c   :  { %63 = vadd.xlane.f32.xlu1 %v48_v4 }
  0x1d   :  { %55 = vadd.xlane.f32.xlu0 %v44_v5  ;;  %v127_v11 = vld [vmem:[#allocation3] sm:$0x3] }
  0x1e   :  { %519 = vmatpush3.bf16.msra.mxu0 %v518_v15  ;;  %525 = vmatpush3.bf16.msra.mxu1 %v518_v15 }
  0x1f   :  { %526 = vmatprep.subr.bf16.mxu0 %v593_v12 }
  0x20   :  { %65 = vadd.xlane.f32.xlu1 %v49_v6 }
  0x21   :  { %57 = vadd.xlane.f32.xlu0 %v45_v7 }
  0x24   :  { %130 = vmax.xlane.f32.xlu1 %v43_v3 }
  0x25   :  { %128 = vmax.xlane.f32.xlu0 %v42_v1 }
  0x28   :  { %138 = vmax.xlane.f32.xlu1 %v47_v2 }
  0x29   :  { %136 = vmax.xlane.f32.xlu0 %v46_v0 }
  0x2c   :  { %140 = vmax.xlane.f32.xlu1 %v48_v4 }
  0x2d   :  { %132 = vmax.xlane.f32.xlu0 %v44_v5 }
  0x30   :  { %142 = vmax.xlane.f32.xlu1 %v49_v6 }
  0x31   :  { %134 = vmax.xlane.f32.xlu0 %v45_v7 }
  0xa1   :  { %v60_v19 = vpop.xlane.xlu1 %59 }
  0xa2   :  { %v52_v20 = vpop.xlane.xlu0 %51  ;;  %v105_v37 = vrot.slane %v60_v19, %v79_v29 }
  0xa3   :  { %v80_v38 = vrot.slane %v52_v20, %v79_v29 }
  0xa5   :  { %v62_v24 = vpop.xlane.xlu1 %61 }
  0xa6   :  { %v54_v25 = vpop.xlane.xlu0 %53  ;;  %v109_v32 = vrot.slane %v62_v24, %v84_v26 }
  0xa7   :  { %v85_v33 = vrot.slane %v54_v25, %v84_v26 }
  0xa8   :  { %v110_v41 = vsel %vm86_vm2, %v109_v32, %v105_v37 }
  0xa9   :  { %v64_v30 = vpop.xlane.xlu1 %63  ;;  %v87_v42 = vsel %vm86_vm2, %v85_v33, %v80_v38 }
  0xaa   :  { %v56_v31 = vpop.xlane.xlu0 %55  ;;  %v114_v35 = vrot.slane %v64_v30, %v91_v28 }
  0xab   :  { %v92_v36 = vrot.slane %v56_v31, %v91_v28 }
  0xac   :  { %v115_v45 = vsel %vm93_vm3, %v114_v35, %v110_v41 }
  0xad   :  { %v66_v39 = vpop.xlane.xlu1 %65  ;;  %v94_v46 = vsel %vm93_vm3, %v92_v36, %v87_v42 }
  0xae   :  { %v58_v40 = vpop.xlane.xlu0 %57  ;;  %v119_v43 = vrot.slane %v66_v39, %v98_v34 }
  0xaf   :  { %v99_v44 = vrot.slane %v58_v40, %v98_v34 }
  0xb0   :  { %v120_v48 = vsel %vm100_vm4, %v119_v43, %v115_v45 }
  0xb1   :  { %v101_v49 = vsel %vm100_vm4, %v99_v44, %v94_v46  ;;  %v131_v51 = vpop.xlane.xlu1 %130 }
  0xb2   :  { %v122_v50 = vsel %vm121_vm5, %v120_v48, %v101_v49  ;;  %v129_v52 = vpop.xlane.xlu0 %128  ;;  %v159_v58 = vrot.slane %v131_v51, %v84_v26 }
  0xb3   :  { %v124_v53 = vadd.f32 %v122_v50, %v50_v47  ;;  %v155_v59 = vrot.slane %v129_v52, %v79_v29 }
  0xb5   :  { %126 = vst.msk [vmem:[#allocation2] sm:$0x3] %vm39_vm0, %v124_v53  ;;  %v139_v54 = vpop.xlane.xlu1 %138  ;;  %v160_v4 = vsel %vm86_vm2, %v159_v58, %v155_v59 }
  0xb6   :  { %v137_v55 = vpop.xlane.xlu0 %136  ;;  %v178_v60 = vrot.slane %v139_v54, %v84_v26 }
  0xb7   :  { %v174_v61 = vrot.slane %v137_v55, %v79_v29  ;;  %v469_v29 = vld [vmem:[%s707_s4] ss:$0 sm:$0xff] }
  0xb9   :  { %v141_v56 = vpop.xlane.xlu1 %140  ;;  %v179_v5 = vsel %vm86_vm2, %v178_v60, %v174_v61 }
  0xba   :  { %v133_v57 = vpop.xlane.xlu0 %132  ;;  %v183_v62 = vrot.slane %v141_v56, %v91_v28 }
  0xbb   :  { %v164_v63 = vrot.slane %v133_v57, %v91_v28 }
  0xbc   :  { %v197_v0 = vld [vmem:[#allocation2] sm:$0x3]  ;;  %v184_v9 = vsel %vm93_vm3, %v183_v62, %v179_v5 }
  0xbd   :  { %v198_v1 = vmul.f32 0.0078125, %v197_v0  ;;  %v143_v2 = vpop.xlane.xlu1 %142  ;;  %v165_v10 = vsel %vm93_vm3, %v164_v63, %v160_v4 }
  0xbe   :  { %v135_v3 = vpop.xlane.xlu0 %134  ;;  %v188_v6 = vrot.slane %v143_v2, %v98_v34 }
  0xbf   :  { %v169_v7 = vrot.slane %v135_v3, %v98_v34  ;;  %494 = vmatmul.mubr.msk.f32.vlgmr.msra.gmra.mrb[0].mxu0 %vm211_vm6, %v198_v1 }
  0xc0   :  { %511 = vmatprep.mubr.msk.f32.mxu0 %vm595_vm1, %v592_v8  ;;  %v189_v12 = vsel %vm100_vm4, %v188_v6, %v184_v9  ;;  %v362_v8 = vld [vmem:[%s706_s3 + $0x8] sm:$0xff]  ;;  %s457_s3 = sshll.u32 %s596_s2, 4  ;;  %s458_s3 = int_to_ptr.vmem [resolvable:$true] %s457_s3 }
  0xc1   :  { %v170_v13 = vsel %vm100_vm4, %v169_v7, %v165_v10  ;;  %v527_v18 = vpack.c.bf16 %v362_v8, %v361_v17  ;;  %s563_s21 = scalar_lea.vmem %s458_s3, 32  ;;  %p568_p9 = scmp.lt.s32.totalorder %s458_s3, %s458_s3 }
  0xc2   :  { %v190_v14 = vsel %vm121_vm5, %v189_v12, %v170_v13  ;;  %p564_p8 = scmp.ne.s32.totalorder %s458_s3, %s563_s21  ;;  %p569_p10 = scmp.lt.s32.totalorder %s563_s21, %s563_s21 }
  0xc3   :  { %v192_v15 = vmax.f32 %v127_v11, %v190_v14  ;;  %528 = vmatpush3.bf16.msra.mxu0 %v527_v18 }
  0xc4   :  { %p570_p11 = por %p569_p10, %p568_p9 }
  0xc5   :  { %193 = vst.msk [vmem:[#allocation3] sm:$0x3] %vm39_vm0, %v192_v15 }
  0xc6   :  { %p571_p12 = pnand %p570_p11, %p564_p8 }
  0xcc   :  { %v199_v16 = vld [vmem:[#allocation3] sm:$0x3] }
  0xcd   :  { %505 = vmatmul.mubr.msk.f32.vlgmr.msra.gmra.mrb[0].mxu1 %vm211_vm6, %v199_v16 }
 0x192   :  { %v281_v19 = vpop.f32.mrb[0].mxu0 }
 0x193   :  { %v495_v20 = vpop.f32.mrb[1].mxu0  ;;  %v282_v22 = vadd.f32 %v466_v21, %v281_v19 }
 0x195   :  { %v285_v26 = vmax.f32 %v282_v22, 0.0 }
 0x1a0   :  { %v355_v23 = vpop.f32.mrb[0].mxu1 }
 0x1a1   :  { %v356_v24 = vadd.f32 %v466_v21, %v355_v23  ;;  %v506_v25 = vpop.f32.mrb[1].mxu1 }
 0x1a3   :  { %v359_v27 = vmax.f32 %v356_v24, 0.0 }
 0x1a5   :  { %v360_v28 = vadd.f32 %v359_v27, %v285_v26 }
 0x1a7   :  { %512 = vmatmul.mubr.msk.f32.vlgmr.msra.gmra.mrb[2].mxu0 %vm370_vm7, %v360_v28 }
 0x27a   :  { %v440_v30 = vpop.f32.mrb[2].mxu0 }
 0x27b   :  { %v441_v31 = vadd.f32 %v469_v29, %v440_v30  ;;  %v513_v32 = vpop.f32.mrb[3].mxu0 }
 0x27d   :  { %v471_v33 = vmul.f32 -1.442695, %v441_v31 }
 0x27f   :  { %537 = vpow2.f32 %v471_v33 }
 0x289   :  { %v538_v34 = vpop.eup %537 }
 0x28a   :  { %v447_v35 = vadd.f32 1.0, %v538_v34 }
 0x28c   :  { %539 = vrcp.f32 %v447_v35 }
 0x296   :  { %v540_v36 = vpop.eup %539 }
 0x297   :  { %450 = vst.msk [vmem:[#allocation7] sm:$0x3] %vm39_vm0, %v540_v36 }
 0x298   :  { %574 = shalt.err (!%p571_p12)
}
 0x299   :  { %s575_s23 = scalar_lea.hbm %s708_s5, 32 }
 0x29a   :  { %p576_p13 = scmp.ne.s32.totalorder %s708_s5, %s575_s23  ;;  %p579_p0 = scmp.lt.u32.totalorder %s575_s23, %s708_s5 }
 0x29c   :  { %p581_p1 = pnand %p579_p0, %p576_p13 }
 0x29e   :  { %584 = shalt.err (!%p581_p1)
}
 0x29f   :  { %460 = dma.vmem_to_hbm [thread:$0]  %s458_s3, 32, %s708_s5, [#allocation6]  }
 0x2a0   :  { %587 = dma.done.wait [#allocation6], 32  }
 0x2a1   :  { %588 = vsyncadd [#allocation6], 4294967264 }
 0x2a2   :  { %464 = vsyncpa [#allocation5], 1 }
 0x2a3   :  { %465 = vsyncpa [#allocation6], 1 }

</bundles_post_ra>
